<compile_context>
chip_gen: v5e
topology: v5e:2x2
jax: 0.10.0
libtpu: 0.0.40
codegen_flags: <defaults>
</compile_context>

<pallas_src>
import functools

import jax
import jax.numpy as jnp
from jax.experimental import pallas as pl
from jax.experimental.pallas import tpu as pltpu

IN_FEATURES = 512
OUT_FEATURES = 2
MAX_TILE_ROWS = 2048  # 2048*512*4B = 4 MiB/buffer -> 8 MiB double-buffered


def _decoder_kernel(x_ref, w_ref, b_ref, o_ref):
    # x_ref: (tb, 512)   w_ref: (512, 2)   b_ref: (1, 2)   o_ref: (tb, 2)
    logits = (
        jnp.dot(x_ref[...], w_ref[...], preferred_element_type=jnp.float32)
        + b_ref[...]
    )
    # 2-class log_softmax via stable softplus (no cross-lane max/sum reduces):
    #   log_softmax[:, 0] = -softplus(d),  log_softmax[:, 1] = -softplus(-d) = d - softplus(d)
    # with d = l1 - l0 and softplus(d) = max(d, 0) + log1p(exp(-|d|)).
    d = logits[:, 1:2] - logits[:, 0:1]
    sp = jnp.maximum(d, 0.0) + jnp.log1p(jnp.exp(-jnp.abs(d)))
    o_ref[...] = jnp.concatenate([-sp, d - sp], axis=1).astype(o_ref.dtype)


def _num_tensorcores_per_chip():
    """Heuristic: v7x has 2 TensorCores per chip; earlier generations have 1."""
    try:
        kind = jax.devices()[0].device_kind.lower()
    except Exception:
        return 1
    return 2 if "v7" in kind else 1


def _round_up(v, m):
    return ((v + m - 1) // m) * m


def _pick_block_b(B, num_cores):
    """Batch tile: biggest tile (<= MAX_TILE_ROWS) on 1-TC parts; even grid on 2-TC parts."""
    if B <= 8:
        return B  # single block equal to the full batch dim
    if num_cores > 1:
        # Split into an even number of grid steps (megacore sharding), smallest n that
        # keeps the tile under the cap.
        n = 1
        while _round_up(pl.cdiv(B, 2 * n), 8) > MAX_TILE_ROWS:
            n += 1
        return _round_up(pl.cdiv(B, 2 * n), 8)
    # Single TensorCore: do not split a batch that fits one tile.
    blk = min(MAX_TILE_ROWS, B)
    return max(8, (blk // 8) * 8)


@functools.partial(jax.jit, static_argnames=("block_b",))
def face_attribute_decoder(x, mask, w_t, b, *, block_b=None):
    """Forward pass of FaceAttributeDecoder.

    x:     (B, 512) float32 or bfloat16 (use whatever dtype is already HBM-resident)
    mask:  passed through unchanged
    w_t:   (512, 2) float32   (transposed nn.Linear weight)
    b:     (2,)     float32
    returns (log_probs (B, 2) float32, mask)
    """
    B, K = x.shape
    assert K == IN_FEATURES
    if block_b is None:
        block_b = _pick_block_b(B, _num_tensorcores_per_chip())

    w_in = w_t.astype(x.dtype)  # tiny (4 KiB max); keeps the MXU inputs dtype-matched
    b2 = b.reshape(1, OUT_FEATURES).astype(jnp.float32)

    grid = (pl.cdiv(B, block_b),)
    itemsize = jnp.dtype(x.dtype).itemsize

    bytes_in = (
        x.size * itemsize
        + w_in.size * w_in.dtype.itemsize
        + b2.size * b2.dtype.itemsize
    )
    bytes_out = B * OUT_FEATURES * 4
    cost = pl.CostEstimate(
        flops=2 * B * IN_FEATURES * OUT_FEATURES + 6 * B,
        transcendentals=2 * B,  # one exp + one log1p per row
        bytes_accessed=bytes_in + bytes_out,
    )

    # Explicit scoped-VMEM budget: double-buffered x tile + double-buffered out tile
    # + weight/bias + slack. Stays well under every generation's physical VMEM.
    vmem_limit = int(
        2 * block_b * IN_FEATURES * itemsize
        + 2 * block_b * OUT_FEATURES * 4
        + 2 * (IN_FEATURES * OUT_FEATURES + OUT_FEATURES) * 4
        + (2 << 20)
    )

    out = pl.pallas_call(
        _decoder_kernel,
        out_shape=jax.ShapeDtypeStruct((B, OUT_FEATURES), jnp.float32),
        grid_spec=pl.GridSpec(
            grid=grid,
            in_specs=[
                pl.BlockSpec((block_b, IN_FEATURES), lambda i: (i, 0)),
                pl.BlockSpec((IN_FEATURES, OUT_FEATURES), lambda i: (0, 0)),
                pl.BlockSpec((1, OUT_FEATURES), lambda i: (0, 0)),
            ],
            out_specs=pl.BlockSpec((block_b, OUT_FEATURES), lambda i: (i, 0)),
        ),
        compiler_params=pltpu.CompilerParams(
            dimension_semantics=("parallel",),
            vmem_limit_bytes=vmem_limit,
        ),
        cost_estimate=cost,
    )(x, w_in, b2)
    return out, mask


def init_params(key):
    """Deterministic init mimicking nn.Linear(512, 2) default (uniform +-1/sqrt(512))."""
    k_w, k_b = jax.random.split(key)
    bound = 1.0 / (IN_FEATURES ** 0.5)
    w = jax.random.uniform(
        k_w, (OUT_FEATURES, IN_FEATURES), jnp.float32, -bound, bound
    )
    b = jax.random.uniform(k_b, (OUT_FEATURES,), jnp.float32, -bound, bound)
    return w.T, b  # pre-transpose weight to (512, 2)


if __name__ == "__main__":
    key = jax.random.PRNGKey(0)
    k_x, k_m, k_p = jax.random.split(key, 3)

    batch = 16
    x = jax.random.normal(k_x, (batch, IN_FEATURES), jnp.float32)
    mask = jax.random.normal(k_m, (batch, 16, 16), jnp.float32)  # opaque pass-through

    w_t, b = init_params(k_p)

    # Main path (auto block_b; full-batch tile on 1-TC parts, even split on v7x).
    out, mask_out = face_attribute_decoder(x, mask, w_t, b)
    out = jax.block_until_ready(out)
    mask_out = jax.block_until_ready(mask_out)

    ref = jax.nn.log_softmax(x @ w_t + b, axis=1)
    assert out.shape == (batch, OUT_FEATURES)
    assert jnp.allclose(out, ref, atol=1e-5), "f32 mismatch vs reference"
    assert (mask_out == mask).all()

    # Ragged batch (B % 8 != 0): tail block padded on read, clipped on write.
    x_odd = x[:12]
    mask_odd = mask[:12]
    out_odd, _ = face_attribute_decoder(x_odd, mask_odd, w_t, b)
    out_odd = jax.block_until_ready(out_odd)
    ref_odd = jax.nn.log_softmax(x_odd @ w_t + b, axis=1)
    assert jnp.allclose(out_odd, ref_odd, atol=1e-5), "ragged-batch mismatch vs reference"

    print("KERNEL_OK")
</pallas_src>

<mosaic_0001>
module attributes {stable_mosaic.version = 11 : i64} {
  func.func @_decoder_kernel(%arg0: i32, %arg1: memref<16x512xf32, #tpu.memory_space<vmem>>, %arg2: memref<512x2xf32, #tpu.memory_space<vmem>>, %arg3: memref<1x2xf32, #tpu.memory_space<vmem>>, %arg4: memref<16x2xf32, #tpu.memory_space<vmem>>) attributes {dimension_semantics = [#tpu.dimension_semantics<parallel>], iteration_bounds = array<i64: 1>, scalar_prefetch = 0 : i64, scratch_operands = 0 : i64, tpu.core_type = #tpu.core_type<tc>, window_params = [{transform_indices = @transform_0, window_bounds = array<i64: 16, 512>}, {pipeline_mode = #tpu.pipeline_mode<synchronous>, transform_indices = @transform_1, window_bounds = array<i64: 512, 2>}, {pipeline_mode = #tpu.pipeline_mode<synchronous>, transform_indices = @transform_2, window_bounds = array<i64: 1, 2>}, {transform_indices = @transform_3, window_bounds = array<i64: 16, 2>}]} {
    %c0 = arith.constant 0 : index
    %c0_0 = arith.constant 0 : index
    %0 = vector.load %arg1[%c0, %c0_0] : memref<16x512xf32, #tpu.memory_space<vmem>>, vector<16x512xf32>
    %c0_1 = arith.constant 0 : index
    %c0_2 = arith.constant 0 : index
    %1 = vector.load %arg2[%c0_1, %c0_2] : memref<512x2xf32, #tpu.memory_space<vmem>>, vector<512x2xf32>
    %cst = arith.constant dense<0.000000e+00> : vector<16x2xf32>
    %2 = tpu.matmul %0, %1, %cst {dimension_numbers = #tpu.dot_dimension_numbers<[1], [0], [0], [1], [0, 0, 1, 1], [], []>} : vector<16x512xf32>, vector<512x2xf32>, vector<16x2xf32> -> vector<16x2xf32>
    %c0_3 = arith.constant 0 : index
    %c0_4 = arith.constant 0 : index
    %3 = vector.load %arg3[%c0_3, %c0_4] : memref<1x2xf32, #tpu.memory_space<vmem>>, vector<1x2xf32>
    %4 = vector.broadcast %3 : vector<1x2xf32> to vector<16x2xf32>
    %5 = arith.addf %2, %4 : vector<16x2xf32>
    %6 = vector.extract_strided_slice %5 {offsets = [0, 1], sizes = [16, 1], strides = [1, 1]} : vector<16x2xf32> to vector<16x1xf32>
    %7 = vector.extract_strided_slice %5 {offsets = [0, 0], sizes = [16, 1], strides = [1, 1]} : vector<16x2xf32> to vector<16x1xf32>
    %8 = arith.subf %6, %7 : vector<16x1xf32>
    %cst_5 = arith.constant 0.000000e+00 : f32
    %9 = vector.broadcast %cst_5 : f32 to vector<16x1xf32>
    %10 = arith.maximumf %8, %9 : vector<16x1xf32>
    %11 = math.absf %8 : vector<16x1xf32>
    %cst_6 = arith.constant 0.000000e+00 : f32
    %12 = vector.broadcast %cst_6 : f32 to vector<16x1xf32>
    %13 = arith.subf %12, %11 : vector<16x1xf32>
    %14 = math.exp %13 : vector<16x1xf32>
    %15 = math.log1p %14 : vector<16x1xf32>
    %16 = arith.addf %10, %15 : vector<16x1xf32>
    %cst_7 = arith.constant 0.000000e+00 : f32
    %17 = vector.broadcast %cst_7 : f32 to vector<16x1xf32>
    %18 = arith.subf %17, %16 : vector<16x1xf32>
    %19 = arith.subf %8, %16 : vector<16x1xf32>
    %20 = tpu.concatenate %18, %19 in 1 : vector<16x1xf32>, vector<16x1xf32> -> vector<16x2xf32>
    %c0_8 = arith.constant 0 : index
    %c0_9 = arith.constant 0 : index
    %21 = vector.load %arg4[%c0_8, %c0_9] : memref<16x2xf32, #tpu.memory_space<vmem>>, vector<16x2xf32>
    tpu.vector_store %arg4[%c0_8, %c0_9], %20 {strides = array<i32>} : memref<16x2xf32, #tpu.memory_space<vmem>>, vector<16x2xf32>,
    return
  }
  func.func @transform_0(%arg0: i32) -> (i32, i32) {
    %c0_i32 = arith.constant 0 : i32
    %c0_i32_0 = arith.constant 0 : i32
    return %arg0, %c0_i32 : i32, i32
  }
  func.func @transform_1(%arg0: i32) -> (i32, i32) {
    %c0_i32 = arith.constant 0 : i32
    %c0_i32_0 = arith.constant 0 : i32
    %c0_i32_1 = arith.constant 0 : i32
    return %c0_i32, %c0_i32_0 : i32, i32
  }
  func.func @transform_2(%arg0: i32) -> (i32, i32) {
    %c0_i32 = arith.constant 0 : i32
    %c0_i32_0 = arith.constant 0 : i32
    %c0_i32_1 = arith.constant 0 : i32
    return %c0_i32, %c0_i32_0 : i32, i32
  }
  func.func @transform_3(%arg0: i32) -> (i32, i32) {
    %c0_i32 = arith.constant 0 : i32
    %c0_i32_0 = arith.constant 0 : i32
    return %arg0, %c0_i32 : i32, i32
  }
}

</mosaic_0001>

<bundles_post_ra>
// kernel: face_attribute_decoder.1
= control target key start
LH: loop header
LB: loop body
LE: loop exit
PB: predicated region body
PF: predicated region fallthrough
CT: control target
= control target key end

     0   :  { %s255_s22 = smov 1   ;;  %vm234_vm2 = vcmask 7168   ;;  %vm237_vm3 = vcmask 15360   ;;  %s502_s1 = inlined_call_operand.vmem [shape: f32[512,2], index: 1, kind: input, shape index: {}]   ;;  %s503_s2 = inlined_call_operand.vmem [shape: f32[1,2], index: 2, kind: input, shape index: {}]   ;;  %s504_s0 = inlined_call_operand.vmem [shape: f32[16,512], index: 0, kind: input, shape index: {}]   ;;  %s505_s3 = inlined_call_operand.vmem [shape: f32[16,2], index: 3, kind: output, shape index: {}]  }
   0x1   :  { %v69_v0 = vld [vmem:[%s502_s1 + $0x178] sm:$0xff]  ;;  %v68_v2 = vld [vmem:[%s502_s1 + $0x170] sm:$0xff]  ;;  %v67_v6 = vld [vmem:[%s502_s1 + $0x168] sm:$0xff] }
   0x2   :  { %v37_v1 = vld [vmem:[%s502_s1 + $0x78] sm:$0xff]  ;;  %136 = vmatpush.msra.mxu2 %v69_v0  ;;  %v36_v4 = vld [vmem:[%s502_s1 + $0x70] sm:$0xff]  ;;  %v35_v8 = vld [vmem:[%s502_s1 + $0x68] sm:$0xff] }
   0x3   :  { %90 = vmatpush.msra.mxu0 %v37_v1  ;;  %v85_v3 = vld [vmem:[%s502_s1 + $0x1f8] sm:$0xff]  ;;  %v84_v7 = vld [vmem:[%s502_s1 + $0x1f0] sm:$0xff]  ;;  %v83_v10 = vld [vmem:[%s502_s1 + $0x1e8] sm:$0xff] }
   0x4   :  { %v53_v5 = vld [vmem:[%s502_s1 + $0xf8] sm:$0xff]  ;;  %159 = vmatpush.msra.mxu3 %v85_v3  ;;  %137 = vmatpush.msra.mxu2 %v68_v2  ;;  %v52_v9 = vld [vmem:[%s502_s1 + $0xf0] sm:$0xff]  ;;  %v66_v11 = vld [vmem:[%s502_s1 + $0x160] sm:$0xff] }
   0x5   :  { %113 = vmatpush.msra.mxu1 %v53_v5  ;;  %91 = vmatpush.msra.mxu0 %v36_v4  ;;  %v34_v12 = vld [vmem:[%s502_s1 + $0x60] sm:$0xff]  ;;  %v51_v13 = vld [vmem:[%s502_s1 + $0xe8] sm:$0xff]  ;;  %v65_v16 = vld [vmem:[%s502_s1 + $0x158] sm:$0xff] }
   0x6   :  { %160 = vmatpush.msra.mxu3 %v84_v7  ;;  %138 = vmatpush.msra.mxu2 %v67_v6  ;;  %v82_v14 = vld [vmem:[%s502_s1 + $0x1e0] sm:$0xff]  ;;  %v33_v17 = vld [vmem:[%s502_s1 + $0x58] sm:$0xff]  ;;  %v64_v20 = vld [vmem:[%s502_s1 + $0x150] sm:$0xff] }
   0x7   :  { %114 = vmatpush.msra.mxu1 %v52_v9  ;;  %92 = vmatpush.msra.mxu0 %v35_v8  ;;  %v50_v15 = vld [vmem:[%s502_s1 + $0xe0] sm:$0xff]  ;;  %v81_v18 = vld [vmem:[%s502_s1 + $0x1d8] sm:$0xff]  ;;  %v32_v21 = vld [vmem:[%s502_s1 + $0x50] sm:$0xff] }
   0x8   :  { %161 = vmatpush.msra.mxu3 %v83_v10  ;;  %139 = vmatpush.msra.mxu2 %v66_v11  ;;  %v49_v19 = vld [vmem:[%s502_s1 + $0xd8] sm:$0xff]  ;;  %v80_v22 = vld [vmem:[%s502_s1 + $0x1d0] sm:$0xff]  ;;  %v63_v24 = vld [vmem:[%s502_s1 + $0x148] sm:$0xff] }
   0x9   :  { %115 = vmatpush.msra.mxu1 %v51_v13  ;;  %93 = vmatpush.msra.mxu0 %v34_v12  ;;  %v48_v23 = vld [vmem:[%s502_s1 + $0xd0] sm:$0xff]  ;;  %v31_v25 = vld [vmem:[%s502_s1 + $0x48] sm:$0xff]  ;;  %v62_v28 = vld [vmem:[%s502_s1 + $0x140] sm:$0xff] }
   0xa   :  { %162 = vmatpush.msra.mxu3 %v82_v14  ;;  %140 = vmatpush.msra.mxu2 %v65_v16  ;;  %v79_v26 = vld [vmem:[%s502_s1 + $0x1c8] sm:$0xff]  ;;  %v30_v29 = vld [vmem:[%s502_s1 + $0x40] sm:$0xff]  ;;  %v61_v32 = vld [vmem:[%s502_s1 + $0x138] sm:$0xff] }
   0xb   :  { %116 = vmatpush.msra.mxu1 %v50_v15  ;;  %94 = vmatpush.msra.mxu0 %v33_v17  ;;  %v47_v27 = vld [vmem:[%s502_s1 + $0xc8] sm:$0xff]  ;;  %v78_v30 = vld [vmem:[%s502_s1 + $0x1c0] sm:$0xff]  ;;  %v29_v33 = vld [vmem:[%s502_s1 + $0x38] sm:$0xff] }
   0xc   :  { %163 = vmatpush.msra.mxu3 %v81_v18  ;;  %141 = vmatpush.msra.mxu2 %v64_v20  ;;  %v46_v31 = vld [vmem:[%s502_s1 + $0xc0] sm:$0xff]  ;;  %v77_v34 = vld [vmem:[%s502_s1 + $0x1b8] sm:$0xff]  ;;  %v60_v36 = vld [vmem:[%s502_s1 + $0x130] sm:$0xff] }
   0xd   :  { %117 = vmatpush.msra.mxu1 %v49_v19  ;;  %95 = vmatpush.msra.mxu0 %v32_v21  ;;  %v45_v35 = vld [vmem:[%s502_s1 + $0xb8] sm:$0xff]  ;;  %v28_v37 = vld [vmem:[%s502_s1 + $0x30] sm:$0xff]  ;;  %v59_v40 = vld [vmem:[%s502_s1 + $0x128] sm:$0xff] }
   0xe   :  { %164 = vmatpush.msra.mxu3 %v80_v22  ;;  %142 = vmatpush.msra.mxu2 %v63_v24  ;;  %v76_v38 = vld [vmem:[%s502_s1 + $0x1b0] sm:$0xff]  ;;  %v27_v41 = vld [vmem:[%s502_s1 + $0x28] sm:$0xff]  ;;  %v58_v44 = vld [vmem:[%s502_s1 + $0x120] sm:$0xff] }
   0xf   :  { %118 = vmatpush.msra.mxu1 %v48_v23  ;;  %96 = vmatpush.msra.mxu0 %v31_v25  ;;  %v44_v39 = vld [vmem:[%s502_s1 + $0xb0] sm:$0xff]  ;;  %v75_v42 = vld [vmem:[%s502_s1 + $0x1a8] sm:$0xff]  ;;  %v26_v45 = vld [vmem:[%s502_s1 + $0x20] sm:$0xff] }
  0x10   :  { %165 = vmatpush.msra.mxu3 %v79_v26  ;;  %143 = vmatpush.msra.mxu2 %v62_v28  ;;  %v43_v43 = vld [vmem:[%s502_s1 + $0xa8] sm:$0xff]  ;;  %v74_v46 = vld [vmem:[%s502_s1 + $0x1a0] sm:$0xff]  ;;  %v57_v48 = vld [vmem:[%s502_s1 + $0x118] sm:$0xff] }
  0x11   :  { %119 = vmatpush.msra.mxu1 %v47_v27  ;;  %97 = vmatpush.msra.mxu0 %v30_v29  ;;  %v42_v47 = vld [vmem:[%s502_s1 + $0xa0] sm:$0xff]  ;;  %v25_v49 = vld [vmem:[%s502_s1 + $0x18] sm:$0xff]  ;;  %v56_v52 = vld [vmem:[%s502_s1 + $0x110] sm:$0xff] }
  0x12   :  { %166 = vmatpush.msra.mxu3 %v78_v30  ;;  %144 = vmatpush.msra.mxu2 %v61_v32  ;;  %v73_v50 = vld [vmem:[%s502_s1 + $0x198] sm:$0xff]  ;;  %v24_v53 = vld [vmem:[%s502_s1 + $0x10] sm:$0xff]  ;;  %v55_v56 = vld [vmem:[%s502_s1 + $0x108] sm:$0xff] }
  0x13   :  { %120 = vmatpush.msra.mxu1 %v46_v31  ;;  %98 = vmatpush.msra.mxu0 %v29_v33  ;;  %v41_v51 = vld [vmem:[%s502_s1 + $0x98] sm:$0xff]  ;;  %v72_v54 = vld [vmem:[%s502_s1 + $0x190] sm:$0xff]  ;;  %v23_v57 = vld [vmem:[%s502_s1 + $0x8] sm:$0xff] }
  0x14   :  { %167 = vmatpush.msra.mxu3 %v77_v34  ;;  %145 = vmatpush.msra.mxu2 %v60_v36  ;;  %v40_v55 = vld [vmem:[%s502_s1 + $0x90] sm:$0xff]  ;;  %v71_v58 = vld [vmem:[%s502_s1 + $0x188] sm:$0xff]  ;;  %v54_v60 = vld [vmem:[%s502_s1 + $0x100] sm:$0xff] }
  0x15   :  { %121 = vmatpush.msra.mxu1 %v45_v35  ;;  %99 = vmatpush.msra.mxu0 %v28_v37  ;;  %v39_v59 = vld [vmem:[%s502_s1 + $0x88] sm:$0xff]  ;;  %v22_v61 = vld [vmem:[%s502_s1] sm:$0xff]  ;;  %v16_v62 = vld [vmem:[%s504_s0 + $0x10] sm:$0xff] }
  0x16   :  { %168 = vmatpush.msra.mxu3 %v76_v38  ;;  %146 = vmatpush.msra.mxu2 %v59_v40  ;;  %v70_v63 = vld [vmem:[%s502_s1 + $0x180] sm:$0xff]  ;;  %v17_v1 = vld [vmem:[%s504_s0 + $0x18] sm:$0xff]  ;;  %v15_v3 = vld [vmem:[%s504_s0 + $0x8] sm:$0xff] }
  0x17   :  { %122 = vmatpush.msra.mxu1 %v44_v39  ;;  %100 = vmatpush.msra.mxu0 %v27_v41  ;;  %v14_v0 = vld [vmem:[%s504_s0] sm:$0xff]  ;;  %v20_v4 = vld [vmem:[%s504_s0 + $0x30] sm:$0xff]  ;;  %v21_v6 = vld [vmem:[%s504_s0 + $0x38] sm:$0xff] }
  0x18   :  { %169 = vmatpush.msra.mxu3 %v75_v42  ;;  %147 = vmatpush.msra.mxu2 %v58_v44  ;;  %v38_v2 = vld [vmem:[%s502_s1 + $0x80] sm:$0xff]  ;;  %v19_v7 = vld [vmem:[%s504_s0 + $0x28] sm:$0xff] }
  0x19   :  { %123 = vmatpush.msra.mxu1 %v43_v43  ;;  %101 = vmatpush.msra.mxu0 %v26_v45  ;;  %v18_v5 = vld [vmem:[%s504_s0 + $0x20] sm:$0xff]  ;;  %s256_s0 = smov 127  }
  0x1a   :  { %170 = vmatpush.msra.mxu3 %v74_v46  ;;  %148 = vmatpush.msra.mxu2 %v57_v48  ;;  %v246_v8 = vld [vmem:[%s503_s2] ss:$0 sm:$0xff] }
  0x1b   :  { %124 = vmatpush.msra.mxu1 %v42_v47  ;;  %102 = vmatpush.msra.mxu0 %v25_v49 }
  0x1c   :  { %171 = vmatpush.msra.mxu3 %v73_v50  ;;  %149 = vmatpush.msra.mxu2 %v56_v52 }
  0x1d   :  { %125 = vmatpush.msra.mxu1 %v41_v51  ;;  %103 = vmatpush.msra.mxu0 %v24_v53 }
  0x1e   :  { %172 = vmatpush.msra.mxu3 %v72_v54  ;;  %150 = vmatpush.msra.mxu2 %v55_v56 }
  0x1f   :  { %126 = vmatpush.msra.mxu1 %v40_v55  ;;  %104 = vmatpush.msra.mxu0 %v23_v57 }
  0x20   :  { %173 = vmatpush.msra.mxu3 %v71_v58  ;;  %151 = vmatpush.msra.mxu2 %v54_v60 }
  0x21   :  { %127 = vmatpush.msra.mxu1 %v39_v59  ;;  %105 = vmatpush.msra.mxu0 %v22_v61 }
  0x22   :  { %152 = vmatmul.f32.vlgmr.msra.gmra.mxu2 %v16_v62  ;;  %174 = vmatpush.msra.mxu3 %v70_v63 }
  0x23   :  { %106 = vmatmul.f32.vlgmr.msra.gmra.mxu0 %v14_v0  ;;  %175 = vmatmul.f32.vlgmr.msra.gmra.mxu3 %v17_v1 }
  0x24   :  { %128 = vmatpush.msra.mxu1 %v38_v2 }
  0x25   :  { %129 = vmatmul.f32.vlgmr.msra.gmra.mxu1 %v15_v3 }
  0x2a   :  { %155 = vmatmul.f32.gmra.mxu2 %v20_v4 }
  0x2b   :  { %109 = vmatmul.f32.gmra.mxu0 %v18_v5  ;;  %178 = vmatmul.f32.gmra.mxu3 %v21_v6 }
  0x2d   :  { %132 = vmatmul.f32.gmra.mxu1 %v19_v7 }
  0xa0   :  { %v107_v9 = vpop.f32.mrf.mxu0 }
  0xa1   :  { %v108_v10 = vadd.f32 %v246_v8, %v107_v9 }
  0xa2   :  { %v130_v11 = vpop.f32.mrf.mxu1 }
  0xa3   :  { %v131_v12 = vadd.f32 %v130_v11, %v108_v10 }
  0xa5   :  { %v153_v13 = vpop.f32.mrf.mxu2 }
  0xa6   :  { %v154_v14 = vadd.f32 %v153_v13, %v131_v12  ;;  %v176_v15 = vpop.f32.mrf.mxu3 }
  0xa8   :  { %v177_v16 = vadd.f32 %v176_v15, %v154_v14  ;;  %v110_v17 = vpop.f32.mrf.mxu0 }
  0xa9   :  { %v111_v18 = vadd.f32 %v246_v8, %v110_v17 }
  0xaa   :  { %184 = vrot.lane.b32.xlu0 %v177_v16, %s255_s22  ;;  %v133_v19 = vpop.f32.mrf.mxu1 }
  0xab   :  { %v134_v20 = vadd.f32 %v133_v19, %v111_v18 }
  0xad   :  { %v156_v21 = vpop.f32.mrf.mxu2 }
  0xae   :  { %v157_v22 = vadd.f32 %v156_v21, %v134_v20  ;;  %v179_v23 = vpop.f32.mrf.mxu3 }
  0xb0   :  { %v180_v24 = vadd.f32 %v179_v23, %v157_v22 }
  0xb2   :  { %186 = vrot.lane.b32.xlu0 %v180_v24, %s255_s22 }
 0x11c   :  { %v185_v25 = vpop.permute.xlu0 %184 }
 0x11d   :  { %v190_v26 = vsub.f32 %v177_v16, %v185_v25 }
 0x11f   :  { %v194_v27 = vand.u32 2147483647, %v190_v26  ;;  %v192_v46 = vmax.f32 %v190_v26, 0.0 }
 0x121   :  { %v196_v28 = vsub.f32 0.0, %v194_v27 }
 0x123   :  { %v198_v29 = vmul.f32 1.442695, %v196_v28 }
 0x124   :  { %v187_v30 = vpop.permute.xlu0 %186 }
 0x125   :  { %247 = vpow2.f32 %v198_v29  ;;  %v191_v31 = vsub.f32 %v180_v24, %v187_v30 }
 0x127   :  { %v195_v32 = vand.u32 2147483647, %v191_v31  ;;  %v193_v56 = vmax.f32 %v191_v31, 0.0 }
 0x129   :  { %v197_v33 = vsub.f32 0.0, %v195_v32 }
 0x12b   :  { %v248_v34 = vpop.eup %247  ;;  %v200_v35 = vmul.f32 1.442695, %v197_v33 }
 0x12c   :  { %v202_v36 = vadd.f32 1.0, %v248_v34  ;;  %v205_v37 = vmul.f32 -0.5, %v248_v34  ;;  %v208_v39 = vand.u32 2147483647, %v248_v34 }
 0x12d   :  { %249 = vpow2.f32 %v200_v35 }
 0x12e   :  { %251 = vlog2.f32 %v202_v36  ;;  %v206_v38 = vadd.f32 1.0, %v205_v37  ;;  %vm209_vm0 = vcmp.lt.f32.partialorder %v208_v39, 0.0004427343 }
 0x130   :  { %v207_v45 = vmul.f32 %v248_v34, %v206_v38 }
 0x133   :  { %v250_v40 = vpop.eup %249 }
 0x134   :  { %v252_v41 = vpop.eup %251  ;;  %v211_v42 = vadd.f32 1.0, %v250_v40  ;;  %v214_v43 = vmul.f32 -0.5, %v250_v40  ;;  %v217_v50 = vand.u32 2147483647, %v250_v40 }
 0x135   :  { %v204_v44 = vmul.f32 0.6931472, %v252_v41 }
 0x136   :  { %253 = vlog2.f32 %v211_v42  ;;  %v215_v49 = vadd.f32 1.0, %v214_v43  ;;  %vm218_vm1 = vcmp.lt.f32.partialorder %v217_v50, 0.0004427343 }
 0x137   :  { %v210_v47 = vsel %vm209_vm0, %v207_v45, %v204_v44 }
 0x138   :  { %v220_v48 = vadd.f32 %v210_v47, %v192_v46  ;;  %v216_v55 = vmul.f32 %v250_v40, %v215_v49 }
 0x13a   :  { %v222_v51 = vsub.f32 0.0, %v220_v48  ;;  %v224_v52 = vsub.f32 %v190_v26, %v220_v48 }
 0x13c   :  { %v254_v53 = vpop.eup %253  ;;  %228 = vrot.lane.b32.xlu1 %v222_v51, %s256_s0 }
 0x13d   :  { %v213_v54 = vmul.f32 0.6931472, %v254_v53 }
 0x13f   :  { %v219_v57 = vsel %vm218_vm1, %v216_v55, %v213_v54 }
 0x140   :  { %v221_v58 = vadd.f32 %v219_v57, %v193_v56 }
 0x142   :  { %v225_v59 = vsub.f32 %v191_v31, %v221_v58  ;;  %v223_v60 = vsub.f32 0.0, %v221_v58 }
 0x144   :  { %230 = vrot.lane.b32.xlu1 %v223_v60, %s256_s0 }
 0x1ae   :  { %v229_v61 = vpop.permute.xlu1 %228 }
 0x1af   :  { %v235_v62 = vsel %vm234_vm2, %v229_v61, %v224_v52 }
 0x1b0   :  { %238 = vst.msk [vmem:[%s505_s3] sm:$0xff] %vm237_vm3, %v235_v62 }
 0x1b6   :  { %v231_v63 = vpop.permute.xlu1 %230 }
 0x1b7   :  { %v236_v0 = vsel %vm234_vm2, %v231_v63, %v225_v59 }
 0x1b8   :  { %239 = vst.msk [vmem:[%s505_s3 + $0x8] sm:$0xff] %vm237_vm3, %v236_v0 }

</bundles_post_ra>
